<compile_context>
chip_gen: v7x
topology: tpu7x:2x2x1
jax: 0.10.0
libtpu: 0.0.40
codegen_flags: <defaults>
</compile_context>

<pallas_src>
import jax
import jax.numpy as jnp
from jax.experimental import pallas as pl
from jax.experimental.pallas import tpu as pltpu


def _add_pe_kernel(x_ref, pe_ref, o_ref):
    # x_ref, pe_ref, o_ref: (tile_rows, lane_cols) VMEM tiles (batch squeezed).
    o_ref[...] = x_ref[...] + pe_ref[...]


def _pick_tile_rows(R: int, C: int, itemsize: int, sublane: int) -> int:
    """Largest sublane-multiple row tile fitting a conservative VMEM budget.

    Working set ~= (x + out + pe) blocks x 2 pipeline buffers = 6 blocks.
    18 MiB budget keeps us under v5e's 16 MiB default scoped VMEM once we
    raise vmem_limit_bytes, and well under v7x's 64 MiB physical VMEM.
    """
    budget = 18 * 1024 * 1024
    max_rows = max(budget // (6 * C * itemsize), sublane)
    max_rows = min(max_rows, 2048)  # diminishing returns past ~2k rows
    if R <= max_rows:
        return R  # full extent -> always a legal block shape
    t = (max_rows // sublane) * sublane
    return max(t, sublane)


def _pe_add_3d(x3, pe2, tile_rows):
    """out[b, r, c] = x3[b, r, c] + pe2[r, c], batch innermost in the grid."""
    B, R, C = x3.shape
    nR = pl.cdiv(R, tile_rows)
    itemsize = jnp.dtype(x3.dtype).itemsize

    return pl.pallas_call(
        _add_pe_kernel,
        out_shape=jax.ShapeDtypeStruct((B, R, C), x3.dtype),
        grid_spec=pltpu.PrefetchScalarGridSpec(
            num_scalar_prefetch=0,
            # Batch is the innermost (fastest-varying) grid axis: pe's block
            # index is constant across it, so its tile stays resident in VMEM.
            grid=(nR, B),
            in_specs=[
                # x: (B, R, C) -> (tile_rows, C) tile, batch dim squeezed.
                pl.BlockSpec((None, tile_rows, C), lambda j, b: (b, j, 0)),
                # pe: (R, C) -> (tile_rows, C) tile, broadcast across batch.
                pl.BlockSpec((tile_rows, C), lambda j, b: (j, 0)),
            ],
            out_specs=pl.BlockSpec((None, tile_rows, C), lambda j, b: (b, j, 0)),
        ),
        compiler_params=pltpu.CompilerParams(
            dimension_semantics=("parallel", "parallel"),
            vmem_limit_bytes=32 * 1024 * 1024,
        ),
        cost_estimate=pl.CostEstimate(
            flops=B * R * C,
            transcendentals=0,
            bytes_accessed=(2 * B * R * C + R * C) * itemsize,
        ),
    )(x3, pe2)


@jax.jit
def add_positional_encoding(x, pe):
    """out[b, l, d] = x[b, l, d] + pe[0, l, d] via a tiled Pallas TPU kernel."""
    B, L, D = x.shape
    pe2 = pe[0, :L, :].astype(x.dtype)  # (L, D), sliced/cast under the same jit

    LD = L * D
    if D % 128 != 0 and LD % 128 == 0:
        # Lane-dense re-tiling: free reshape of contiguous row-major data so the
        # last block dim is a full 128-lane multiple (unmasked stores).
        C = 128
        R = LD // C
        x3 = x.reshape(B, R, C)
        pe2 = pe2.reshape(R, C)
    else:
        # D already lane-dense (multiple of 128), or no clean re-tiling exists
        # (falls back to masked stores on the last dim, still correct).
        R, C = L, D
        x3 = x

    itemsize = jnp.dtype(x.dtype).itemsize
    sublane = max(8, 32 // itemsize)  # 8 for f32, 16 for bf16, 32 for int8/fp8
    tile_rows = _pick_tile_rows(R, C, itemsize, sublane)

    out3 = _pe_add_3d(x3, pe2, tile_rows)
    return out3.reshape(B, L, D)


class ImagePositionalEncoding:
    """JAX/Pallas port of the PyTorch ImagePositionalEncoding module."""

    def __init__(self, emb_dim: int = 512, dropout: float = 0.0,
                 max_len: int = 512):
        # Learnable positional encoding, zero-initialized like the PyTorch
        # nn.Parameter(torch.zeros(1, max_len, emb_dim)).
        self.pe = jnp.zeros((1, max_len, emb_dim), dtype=jnp.float32)
        # `dropout` is never applied in the PyTorch forward -> no-op here.
        self.dropout = dropout

    def __call__(self, x):
        # x: (B, L, emb_dim); out = x + pe[:, :L, :]
        assert x.shape[1] <= self.pe.shape[1], (
            f"sequence length {x.shape[1]} exceeds max_len {self.pe.shape[1]}")
        assert x.shape[2] == self.pe.shape[2], (
            f"emb_dim mismatch: {x.shape[2]} vs {self.pe.shape[2]}")
        return add_positional_encoding(x, self.pe)


if __name__ == "__main__":
    # Small shapes consistent with the module: batch=2, seq=8, hidden=32.
    B, L, D = 2, 8, 32
    max_len = 512

    key = jax.random.PRNGKey(0)
    kx, kp = jax.random.split(key)
    x = jax.random.normal(kx, (B, L, D), dtype=jnp.float32)

    model = ImagePositionalEncoding(emb_dim=D, dropout=0.0, max_len=max_len)
    # The PE parameter is zero-initialized (like PyTorch); give it nonzero
    # values here so the correctness check actually exercises the add.
    model.pe = jax.random.normal(kp, (1, max_len, D), dtype=jnp.float32)

    out = model(x)
    out = jax.block_until_ready(out)

    # Pure-JAX reference of the PyTorch forward.
    ref = x + model.pe[:, :L, :]
    assert out.shape == (B, L, D)
    assert jnp.allclose(out, ref, atol=1e-6, rtol=1e-6)

    print("KERNEL_OK")
</pallas_src>

<mosaic_0001>
module attributes {stable_mosaic.version = 11 : i64} {
  func.func @_add_pe_kernel(%arg0: i32, %arg1: i32, %arg2: memref<1x2x128xf32, #tpu.memory_space<vmem>>, %arg3: memref<2x128xf32, #tpu.memory_space<vmem>>, %arg4: memref<1x2x128xf32, #tpu.memory_space<vmem>>) attributes {dimension_semantics = [#tpu.dimension_semantics<parallel>, #tpu.dimension_semantics<parallel>], iteration_bounds = array<i64: 1, 2>, scalar_prefetch = 0 : i64, scratch_operands = 0 : i64, tpu.core_type = #tpu.core_type<tc>, window_params = [{transform_indices = @transform_0, window_bounds = array<i64: 1, 2, 128>}, {transform_indices = @transform_1, window_bounds = array<i64: 2, 128>}, {transform_indices = @transform_2, window_bounds = array<i64: 1, 2, 128>}]} {
    %c0 = arith.constant 0 : index
    %c0_0 = arith.constant 0 : index
    %c0_1 = arith.constant 0 : index
    %0 = vector.load %arg2[%c0, %c0_0, %c0_1] : memref<1x2x128xf32, #tpu.memory_space<vmem>>, vector<1x2x128xf32>
    %1 = vector.shape_cast %0 : vector<1x2x128xf32> to vector<2x128xf32>
    %c0_2 = arith.constant 0 : index
    %c0_3 = arith.constant 0 : index
    %2 = vector.load %arg3[%c0_2, %c0_3] : memref<2x128xf32, #tpu.memory_space<vmem>>, vector<2x128xf32>
    %3 = arith.addf %1, %2 : vector<2x128xf32>
    %c0_4 = arith.constant 0 : index
    %c0_5 = arith.constant 0 : index
    %c0_6 = arith.constant 0 : index
    %4 = vector.load %arg4[%c0_4, %c0_5, %c0_6] : memref<1x2x128xf32, #tpu.memory_space<vmem>>, vector<1x2x128xf32>
    %5 = vector.shape_cast %4 : vector<1x2x128xf32> to vector<2x128xf32>
    %6 = vector.shape_cast %3 : vector<2x128xf32> to vector<1x2x128xf32>
    tpu.vector_store %arg4[%c0_4, %c0_5, %c0_6], %6 {strides = array<i32>} : memref<1x2x128xf32, #tpu.memory_space<vmem>>, vector<1x2x128xf32>,
    return
  }
  func.func @transform_0(%arg0: i32, %arg1: i32) -> (i32, i32, i32) {
    %c0_i32 = arith.constant 0 : i32
    %c0_i32_0 = arith.constant 0 : i32
    return %arg1, %arg0, %c0_i32 : i32, i32, i32
  }
  func.func @transform_1(%arg0: i32, %arg1: i32) -> (i32, i32) {
    %c0_i32 = arith.constant 0 : i32
    %c0_i32_0 = arith.constant 0 : i32
    return %arg0, %c0_i32 : i32, i32
  }
  func.func @transform_2(%arg0: i32, %arg1: i32) -> (i32, i32, i32) {
    %c0_i32 = arith.constant 0 : i32
    %c0_i32_0 = arith.constant 0 : i32
    return %arg1, %arg0, %c0_i32 : i32, i32, i32
  }
}

</mosaic_0001>

<bundles_post_ra>
// kernel: squeeze.1
= control target key start
LH: loop header
LB: loop body
LE: loop exit
PB: predicated region body
PF: predicated region fallthrough
CT: control target
= control target key end

     0   :  { %s7_s6 = smov 3  ;;  %s14_s9 = smov 3  ;;  %vm4_vm0 = vcmask 261120   ;;  %vm11_vm1 = vcmask 1048320   ;;  %vm18_vm2 = vcmask 785920   ;;  %vm25_vm3 = vcmask 523520   ;;  %s67_s0 = inlined_call_operand.vmem [shape: f32[1,8,32], index: 0, kind: input, shape index: {}]   ;;  %s68_s1 = inlined_call_operand.vmem [shape: f32[2,128], index: 1, kind: output, shape index: {}]  }
   0x1   :  { %v33_v0 = vld [vmem:[%s67_s0 + $0x3] ss:$4 sm:%s7_s6]   ;;  %s39_s10 = smov 96   ;;  %s21_s11 = smov 3  ;;  %v34_v1 = vld [vmem:[%s67_s0 + $0x2] ss:$4 sm:%s14_s9]  }
   0x2   :  { %9 = vrot.lane.b32.xlu0 %v33_v0, %s39_s10  ;;  %v35_v2 = vld [vmem:[%s67_s0 + $0x1] ss:$4 sm:%s21_s11]   ;;  %s2_s16 = smov 3  ;;  %s40_s17 = smov 32  }
   0x3   :  { %23 = vrot.lane.b32.xlu1 %v35_v2, %s40_s17  ;;  %v3_v3 = vld [vmem:[%s67_s0] ss:$4 sm:%s2_s16]   ;;  %s41_s0 = smov 64  }
   0x4   :  { %5 = vst.msk [vmem:[#allocation0] sm:$0x3] %vm4_vm0, %v3_v3  }
   0x6   :  { %16 = vrot.lane.b32.xlu0 %v34_v1, %s41_s0 }
  0x74   :  { %v10_v4 = vpop.permute.xlu0 %9  }
  0x75   :  { %12 = vst.msk [vmem:[#allocation0] sm:$0x3] %vm11_vm1, %v10_v4   ;;  %v24_v5 = vpop.permute.xlu1 %23  }
  0x78   :  { %v17_v6 = vpop.permute.xlu0 %16  }
  0x79   :  { %19 = vst.msk [vmem:[#allocation0] sm:$0x3] %vm18_vm2, %v17_v6  }
  0x7a   :  { %26 = vst.msk [vmem:[#allocation0] sm:$0x3] %vm25_vm3, %v24_v5  }
  0x81   :  { %v30_v7 = vld [vmem:[#allocation0] sm:$0x3] }
  0x82   :  { %32 = vst [vmem:[%s68_s1] sm:$0x3] %v30_v7 }

</bundles_post_ra>
